<compile_context>
chip_gen: v7x
topology: tpu7x:2x2x1
jax: 0.10.0
libtpu: 0.0.40
codegen_flags: <defaults>
</compile_context>

<pallas_src>
from functools import partial

import jax
import jax.numpy as jnp
from jax.experimental import pallas as pl
from jax.experimental.pallas import tpu as pltpu

HIDDEN1 = 256
HIDDEN2 = 128
LANE = 128
SUBLANE = 8
C_PAD = 128          # lane-dense logits width (num_classes <= 128)
MAX_TILE_B = 1024    # largest batch tile we ever use


def _round_up(x, m):
    return ((x + m - 1) // m) * m


def _vmem_budget_bytes():
    """Per-generation usable VMEM budget (v5e/v6e ~100 MiB, v7x ~51 MiB)."""
    try:
        cap = int(pltpu.get_tpu_info().vmem_capacity_bytes)
    except Exception:
        cap = 64 << 20  # conservative (v7x-sized) fallback
    return min(int(cap * 0.8), 100 << 20)


_VMEM_BUDGET = _vmem_budget_bytes()
_SINGLE_BUFFER_OK = hasattr(pl, "Buffered")


# ---------------------------------------------------------------------------
# Kernel
# ---------------------------------------------------------------------------
def mlp_kernel(x_ref, w1_ref, b1_ref, w2_ref, b2_ref, w3_ref, b3_ref, o_ref):
    # fc1: cast the f32 x tile to bf16 at the MXU input (saves the extra HBM
    # pass a wrapper-side cast would cost); f32 accumulation, f32 bias + ReLU.
    h1 = jnp.dot(x_ref[...].astype(jnp.bfloat16), w1_ref[...],
                 preferred_element_type=jnp.float32)
    h1 = jnp.maximum(h1 + b1_ref[...], 0.0)
    # dropout1: identity (eval mode)

    # fc2
    h2 = jnp.dot(h1.astype(w2_ref.dtype), w2_ref[...],
                 preferred_element_type=jnp.float32)
    h2 = jnp.maximum(h2 + b2_ref[...], 0.0)
    # dropout2: identity (eval mode)

    # fc3 (logits, lane-padded to 128 columns), stored bf16 (lane-dense, half DMA)
    out = jnp.dot(h2.astype(w3_ref.dtype), w3_ref[...],
                  preferred_element_type=jnp.float32)
    o_ref[...] = (out + b3_ref[...]).astype(o_ref.dtype)


# ---------------------------------------------------------------------------
# One-time parameter preparation (outside jit: runs once, not per forward)
# ---------------------------------------------------------------------------
def prepare_params(w1, b1, w2, b2, w3, b3):
    """Pad/cast weights once: returns VMEM-friendly bf16 weights + f32 biases."""
    d_in = w1.shape[0]
    num_classes = w3.shape[1]
    assert num_classes <= C_PAD, "num_classes must be <= 128"
    d_in_pad = _round_up(d_in, LANE)

    w1_p = jnp.zeros((d_in_pad, HIDDEN1), jnp.bfloat16)
    w1_p = w1_p.at[:d_in, :].set(w1.astype(jnp.bfloat16))
    w2_p = w2.astype(jnp.bfloat16)
    w3_p = jnp.zeros((HIDDEN2, C_PAD), jnp.bfloat16)
    w3_p = w3_p.at[:, :num_classes].set(w3.astype(jnp.bfloat16))

    b1_p = b1.reshape(1, HIDDEN1).astype(jnp.float32)
    b2_p = b2.reshape(1, HIDDEN2).astype(jnp.float32)
    b3_p = jnp.zeros((1, C_PAD), jnp.float32)
    b3_p = b3_p.at[:, :num_classes].set(b3.reshape(1, -1).astype(jnp.float32))

    params = (w1_p, b1_p, w2_p, b2_p, w3_p, b3_p)
    return params, d_in, num_classes


# ---------------------------------------------------------------------------
# Tile selection from the VMEM budget (static shape math)
# ---------------------------------------------------------------------------
def _select_tile_b(B, d_in_pad, weight_bytes):
    bytes_per_row = (
        d_in_pad * 4 * 2            # f32 x tile, double-buffered
        + d_in_pad * 2              # in-kernel bf16 copy of the x tile
        + C_PAD * 2 * 2             # bf16 output tile, double-buffered
        + (HIDDEN1 + HIDDEN2) * 6   # f32 h1/h2 + bf16 casts for fc2/fc3 inputs
    )
    headroom = 4 << 20
    # Budget weights as double-buffered (worst case: Buffered(1) unsupported).
    avail = _VMEM_BUDGET - 2 * weight_bytes - headroom
    cap_budget = max(SUBLANE, (avail // bytes_per_row) // SUBLANE * SUBLANE)

    b_pad8 = _round_up(B, SUBLANE)
    if b_pad8 <= SUBLANE:
        return SUBLANE
    # Keep >=2 grid steps so v7x's two TensorCores can split the batch and the
    # DMA/compute pipeline has something to overlap.
    cap_split = max(SUBLANE, (b_pad8 // 2) // SUBLANE * SUBLANE)
    return max(SUBLANE, min(MAX_TILE_B, cap_budget, cap_split))


# ---------------------------------------------------------------------------
# Jitted forward
# ---------------------------------------------------------------------------
@partial(jax.jit, static_argnames=("num_classes", "single_buffer"))
def _mlp_forward_impl(x, w1_p, b1_p, w2_p, b2_p, w3_p, b3_p, *,
                      num_classes, single_buffer):
    B = x.shape[0]
    x_flat = x.reshape(B, -1)                 # (B, 1*W*H), matches x.view(B, -1)
    d_in = x_flat.shape[1]
    d_in_pad = w1_p.shape[0]

    weight_bytes = sum(int(a.size) * a.dtype.itemsize
                       for a in (w1_p, b1_p, w2_p, b2_p, w3_p, b3_p))
    tile_b = _select_tile_b(B, d_in_pad, weight_bytes)
    b_pad = _round_up(B, tile_b)
    grid = (b_pad // tile_b,)

    if b_pad == B and d_in_pad == d_in:
        # Fast path: hand x straight to the kernel (f32); no padded HBM copy.
        x_p = x_flat
    else:
        x_p = jnp.zeros((b_pad, d_in_pad), jnp.float32).at[:B, :d_in].set(x_flat)

    # Resident weight/bias blocks: constant index_map, single-buffer if possible.
    wkw = {"pipeline_mode": pl.Buffered(1)} if single_buffer else {}

    in_specs = [
        pl.BlockSpec((tile_b, d_in_pad), lambda i: (i, 0)),          # x tile
        pl.BlockSpec((d_in_pad, HIDDEN1), lambda i: (0, 0), **wkw),  # w1
        pl.BlockSpec((1, HIDDEN1), lambda i: (0, 0), **wkw),         # b1
        pl.BlockSpec((HIDDEN1, HIDDEN2), lambda i: (0, 0), **wkw),   # w2
        pl.BlockSpec((1, HIDDEN2), lambda i: (0, 0), **wkw),         # b2
        pl.BlockSpec((HIDDEN2, C_PAD), lambda i: (0, 0), **wkw),     # w3
        pl.BlockSpec((1, C_PAD), lambda i: (0, 0), **wkw),           # b3
    ]

    flops = 2 * b_pad * (d_in_pad * HIDDEN1 + HIDDEN1 * HIDDEN2 + HIDDEN2 * C_PAD)
    bytes_accessed = (b_pad * d_in_pad * 4       # x (f32, read once by kernel)
                      + weight_bytes             # resident weights/biases
                      + b_pad * C_PAD * 2)       # bf16 logits writeback

    out = pl.pallas_call(
        mlp_kernel,
        out_shape=jax.ShapeDtypeStruct((b_pad, C_PAD), jnp.bfloat16),
        grid=grid,
        in_specs=in_specs,
        out_specs=pl.BlockSpec((tile_b, C_PAD), lambda i: (i, 0)),
        compiler_params=pltpu.CompilerParams(
            dimension_semantics=("parallel",),
            vmem_limit_bytes=int(_VMEM_BUDGET),
        ),
        cost_estimate=pl.CostEstimate(
            flops=flops, transcendentals=0, bytes_accessed=bytes_accessed),
    )(x_p, w1_p, b1_p, w2_p, b2_p, w3_p, b3_p)

    # Strip batch/class padding; return f32 logits like the PyTorch module.
    return out[:B, :num_classes].astype(jnp.float32)


def mlp_forward(x, prepared_params, num_classes):
    """x: (B, 1, W, H) f32; prepared_params from prepare_params()."""
    global _SINGLE_BUFFER_OK
    if _SINGLE_BUFFER_OK:
        try:
            return _mlp_forward_impl(x, *prepared_params,
                                     num_classes=num_classes, single_buffer=True)
        except Exception:
            # pipeline_mode / Buffered(1) unsupported on this jax: fall back.
            _SINGLE_BUFFER_OK = False
    return _mlp_forward_impl(x, *prepared_params,
                             num_classes=num_classes, single_buffer=False)


# ---------------------------------------------------------------------------
# Init + reference
# ---------------------------------------------------------------------------
def init_params(key, input_w, input_h, num_classes=3):
    """Deterministic PyTorch-style (uniform +-1/sqrt(fan_in)) initialization."""
    d_in = 1 * input_w * input_h
    dims = [(d_in, HIDDEN1), (HIDDEN1, HIDDEN2), (HIDDEN2, num_classes)]
    params = []
    for fan_in, fan_out in dims:
        key, kw, kb = jax.random.split(key, 3)
        bound = 1.0 / jnp.sqrt(fan_in)
        w = jax.random.uniform(kw, (fan_in, fan_out), jnp.float32, -bound, bound)
        b = jax.random.uniform(kb, (1, fan_out), jnp.float32, -bound, bound)
        params += [w, b]
    return params


def reference_forward(x, w1, b1, w2, b2, w3, b3):
    """Pure-JAX reference with the same bf16-input / f32-accumulate numerics."""
    def bf(a):
        return a.astype(jnp.bfloat16).astype(jnp.float32)
    xf = x.reshape(x.shape[0], -1)
    h1 = jnp.maximum(bf(xf) @ bf(w1) + b1.reshape(1, -1), 0.0)
    h2 = jnp.maximum(bf(h1) @ bf(w2) + b2.reshape(1, -1), 0.0)
    out = bf(h2) @ bf(w3) + b3.reshape(1, -1)
    return bf(out)  # kernel stores bf16 logits


if __name__ == "__main__":
    input_w, input_h, num_classes = 16, 16, 3
    batch = 2

    key = jax.random.PRNGKey(0)
    key, kx = jax.random.split(key)
    # NCHW input, as the module's reshape_layer implies: (B, 1, W, H)
    x = jax.random.normal(kx, (batch, 1, input_w, input_h), jnp.float32)

    w1, b1, w2, b2, w3, b3 = init_params(key, input_w, input_h, num_classes)
    prepared, d_in, n_cls = prepare_params(w1, b1, w2, b2, w3, b3)

    out = mlp_forward(x, prepared, n_cls)
    out = jax.block_until_ready(out)

    ref = reference_forward(x, w1, b1, w2, b2, w3, b3)
    assert out.shape == (batch, num_classes), out.shape
    max_err = jnp.max(jnp.abs(out - ref))
    assert jnp.allclose(out, ref, atol=2e-2, rtol=2e-2), f"max abs err {max_err}"

    print("KERNEL_OK")
</pallas_src>

<mosaic_0001>
module attributes {stable_mosaic.version = 11 : i64} {
  func.func @mlp_kernel(%arg0: i32, %arg1: memref<8x256xf32, #tpu.memory_space<vmem>>, %arg2: memref<256x256xbf16, #tpu.memory_space<vmem>>, %arg3: memref<1x256xf32, #tpu.memory_space<vmem>>, %arg4: memref<256x128xbf16, #tpu.memory_space<vmem>>, %arg5: memref<1x128xf32, #tpu.memory_space<vmem>>, %arg6: memref<128x128xbf16, #tpu.memory_space<vmem>>, %arg7: memref<1x128xf32, #tpu.memory_space<vmem>>, %arg8: memref<8x128xbf16, #tpu.memory_space<vmem>>) attributes {dimension_semantics = [#tpu.dimension_semantics<parallel>], iteration_bounds = array<i64: 1>, scalar_prefetch = 0 : i64, scratch_operands = 0 : i64, tpu.core_type = #tpu.core_type<tc>, window_params = [{transform_indices = @transform_0, window_bounds = array<i64: 8, 256>}, {pipeline_mode = #tpu.pipeline_mode<synchronous>, transform_indices = @transform_1, window_bounds = array<i64: 256, 256>}, {pipeline_mode = #tpu.pipeline_mode<synchronous>, transform_indices = @transform_2, window_bounds = array<i64: 1, 256>}, {pipeline_mode = #tpu.pipeline_mode<synchronous>, transform_indices = @transform_3, window_bounds = array<i64: 256, 128>}, {pipeline_mode = #tpu.pipeline_mode<synchronous>, transform_indices = @transform_4, window_bounds = array<i64: 1, 128>}, {pipeline_mode = #tpu.pipeline_mode<synchronous>, transform_indices = @transform_5, window_bounds = array<i64: 128, 128>}, {pipeline_mode = #tpu.pipeline_mode<synchronous>, transform_indices = @transform_6, window_bounds = array<i64: 1, 128>}, {transform_indices = @transform_7, window_bounds = array<i64: 8, 128>}]} {
    %c0 = arith.constant 0 : index
    %c0_0 = arith.constant 0 : index
    %0 = vector.load %arg1[%c0, %c0_0] : memref<8x256xf32, #tpu.memory_space<vmem>>, vector<8x256xf32>
    %1 = arith.truncf %0 : vector<8x256xf32> to vector<8x256xbf16>
    %c0_1 = arith.constant 0 : index
    %c0_2 = arith.constant 0 : index
    %2 = vector.load %arg2[%c0_1, %c0_2] : memref<256x256xbf16, #tpu.memory_space<vmem>>, vector<256x256xbf16>
    %cst = arith.constant dense<0.000000e+00> : vector<8x256xf32>
    %3 = tpu.matmul %1, %2, %cst {dimension_numbers = #tpu.dot_dimension_numbers<[1], [0], [0], [1], [0, 0, 1, 1], [], []>} : vector<8x256xbf16>, vector<256x256xbf16>, vector<8x256xf32> -> vector<8x256xf32>
    %c0_3 = arith.constant 0 : index
    %c0_4 = arith.constant 0 : index
    %4 = vector.load %arg3[%c0_3, %c0_4] : memref<1x256xf32, #tpu.memory_space<vmem>>, vector<1x256xf32>
    %5 = vector.broadcast %4 : vector<1x256xf32> to vector<8x256xf32>
    %6 = arith.addf %3, %5 : vector<8x256xf32>
    %cst_5 = arith.constant 0.000000e+00 : f32
    %7 = vector.broadcast %cst_5 : f32 to vector<8x256xf32>
    %8 = arith.maximumf %6, %7 : vector<8x256xf32>
    %9 = arith.truncf %8 : vector<8x256xf32> to vector<8x256xbf16>
    %c0_6 = arith.constant 0 : index
    %c0_7 = arith.constant 0 : index
    %10 = vector.load %arg4[%c0_6, %c0_7] : memref<256x128xbf16, #tpu.memory_space<vmem>>, vector<256x128xbf16>
    %cst_8 = arith.constant dense<0.000000e+00> : vector<8x128xf32>
    %11 = tpu.matmul %9, %10, %cst_8 {dimension_numbers = #tpu.dot_dimension_numbers<[1], [0], [0], [1], [0, 0, 1, 1], [], []>} : vector<8x256xbf16>, vector<256x128xbf16>, vector<8x128xf32> -> vector<8x128xf32>
    %c0_9 = arith.constant 0 : index
    %c0_10 = arith.constant 0 : index
    %12 = vector.load %arg5[%c0_9, %c0_10] : memref<1x128xf32, #tpu.memory_space<vmem>>, vector<1x128xf32>
    %13 = vector.broadcast %12 : vector<1x128xf32> to vector<8x128xf32>
    %14 = arith.addf %11, %13 : vector<8x128xf32>
    %cst_11 = arith.constant 0.000000e+00 : f32
    %15 = vector.broadcast %cst_11 : f32 to vector<8x128xf32>
    %16 = arith.maximumf %14, %15 : vector<8x128xf32>
    %17 = arith.truncf %16 : vector<8x128xf32> to vector<8x128xbf16>
    %c0_12 = arith.constant 0 : index
    %c0_13 = arith.constant 0 : index
    %18 = vector.load %arg6[%c0_12, %c0_13] : memref<128x128xbf16, #tpu.memory_space<vmem>>, vector<128x128xbf16>
    %cst_14 = arith.constant dense<0.000000e+00> : vector<8x128xf32>
    %19 = tpu.matmul %17, %18, %cst_14 {dimension_numbers = #tpu.dot_dimension_numbers<[1], [0], [0], [1], [0, 0, 1, 1], [], []>} : vector<8x128xbf16>, vector<128x128xbf16>, vector<8x128xf32> -> vector<8x128xf32>
    %c0_15 = arith.constant 0 : index
    %c0_16 = arith.constant 0 : index
    %20 = vector.load %arg7[%c0_15, %c0_16] : memref<1x128xf32, #tpu.memory_space<vmem>>, vector<1x128xf32>
    %21 = vector.broadcast %20 : vector<1x128xf32> to vector<8x128xf32>
    %22 = arith.addf %19, %21 : vector<8x128xf32>
    %23 = arith.truncf %22 : vector<8x128xf32> to vector<8x128xbf16>
    %c0_17 = arith.constant 0 : index
    %c0_18 = arith.constant 0 : index
    %24 = vector.load %arg8[%c0_17, %c0_18] : memref<8x128xbf16, #tpu.memory_space<vmem>>, vector<8x128xbf16>
    tpu.vector_store %arg8[%c0_17, %c0_18], %23 {strides = array<i32>} : memref<8x128xbf16, #tpu.memory_space<vmem>>, vector<8x128xbf16>,
    return
  }
  func.func @transform_0(%arg0: i32) -> (i32, i32) {
    %c0_i32 = arith.constant 0 : i32
    %c0_i32_0 = arith.constant 0 : i32
    return %arg0, %c0_i32 : i32, i32
  }
  func.func @transform_1(%arg0: i32) -> (i32, i32) {
    %c0_i32 = arith.constant 0 : i32
    %c0_i32_0 = arith.constant 0 : i32
    %c0_i32_1 = arith.constant 0 : i32
    return %c0_i32, %c0_i32_0 : i32, i32
  }
  func.func @transform_2(%arg0: i32) -> (i32, i32) {
    %c0_i32 = arith.constant 0 : i32
    %c0_i32_0 = arith.constant 0 : i32
    %c0_i32_1 = arith.constant 0 : i32
    return %c0_i32, %c0_i32_0 : i32, i32
  }
  func.func @transform_3(%arg0: i32) -> (i32, i32) {
    %c0_i32 = arith.constant 0 : i32
    %c0_i32_0 = arith.constant 0 : i32
    %c0_i32_1 = arith.constant 0 : i32
    return %c0_i32, %c0_i32_0 : i32, i32
  }
  func.func @transform_4(%arg0: i32) -> (i32, i32) {
    %c0_i32 = arith.constant 0 : i32
    %c0_i32_0 = arith.constant 0 : i32
    %c0_i32_1 = arith.constant 0 : i32
    return %c0_i32, %c0_i32_0 : i32, i32
  }
  func.func @transform_5(%arg0: i32) -> (i32, i32) {
    %c0_i32 = arith.constant 0 : i32
    %c0_i32_0 = arith.constant 0 : i32
    %c0_i32_1 = arith.constant 0 : i32
    return %c0_i32, %c0_i32_0 : i32, i32
  }
  func.func @transform_6(%arg0: i32) -> (i32, i32) {
    %c0_i32 = arith.constant 0 : i32
    %c0_i32_0 = arith.constant 0 : i32
    %c0_i32_1 = arith.constant 0 : i32
    return %c0_i32, %c0_i32_0 : i32, i32
  }
  func.func @transform_7(%arg0: i32) -> (i32, i32) {
    %c0_i32 = arith.constant 0 : i32
    %c0_i32_0 = arith.constant 0 : i32
    return %arg0, %c0_i32 : i32, i32
  }
}

module attributes {stable_mosaic.version = 11 : i64} {
  func.func @mlp_kernel(%arg0: i32, %arg1: memref<8x256xf32, #tpu.memory_space<vmem>>, %arg2: memref<256x256xbf16, #tpu.memory_space<vmem>>, %arg3: memref<1x256xf32, #tpu.memory_space<vmem>>, %arg4: memref<256x128xbf16, #tpu.memory_space<vmem>>, %arg5: memref<1x128xf32, #tpu.memory_space<vmem>>, %arg6: memref<128x128xbf16, #tpu.memory_space<vmem>>, %arg7: memref<1x128xf32, #tpu.memory_space<vmem>>, %arg8: memref<8x128xbf16, #tpu.memory_space<vmem>>) attributes {dimension_semantics = [#tpu.dimension_semantics<parallel>], iteration_bounds = array<i64: 1>, scalar_prefetch = 0 : i64, scratch_operands = 0 : i64, tpu.core_type = #tpu.core_type<tc>, window_params = [{transform_indices = @transform_0, window_bounds = array<i64: 8, 256>}, {pipeline_mode = #tpu.pipeline_mode<synchronous>, transform_indices = @transform_1, window_bounds = array<i64: 256, 256>}, {pipeline_mode = #tpu.pipeline_mode<synchronous>, transform_indices = @transform_2, window_bounds = array<i64: 1, 256>}, {pipeline_mode = #tpu.pipeline_mode<synchronous>, transform_indices = @transform_3, window_bounds = array<i64: 256, 128>}, {pipeline_mode = #tpu.pipeline_mode<synchronous>, transform_indices = @transform_4, window_bounds = array<i64: 1, 128>}, {pipeline_mode = #tpu.pipeline_mode<synchronous>, transform_indices = @transform_5, window_bounds = array<i64: 128, 128>}, {pipeline_mode = #tpu.pipeline_mode<synchronous>, transform_indices = @transform_6, window_bounds = array<i64: 1, 128>}, {transform_indices = @transform_7, window_bounds = array<i64: 8, 128>}]} {
    %c0 = arith.constant 0 : index
    %c0_0 = arith.constant 0 : index
    %0 = vector.load %arg1[%c0, %c0_0] : memref<8x256xf32, #tpu.memory_space<vmem>>, vector<8x256xf32>
    %1 = arith.truncf %0 : vector<8x256xf32> to vector<8x256xbf16>
    %c0_1 = arith.constant 0 : index
    %c0_2 = arith.constant 0 : index
    %2 = vector.load %arg2[%c0_1, %c0_2] : memref<256x256xbf16, #tpu.memory_space<vmem>>, vector<256x256xbf16>
    %cst = arith.constant dense<0.000000e+00> : vector<8x256xf32>
    %3 = tpu.matmul %1, %2, %cst {dimension_numbers = #tpu.dot_dimension_numbers<[1], [0], [0], [1], [0, 0, 1, 1], [], []>} : vector<8x256xbf16>, vector<256x256xbf16>, vector<8x256xf32> -> vector<8x256xf32>
    %c0_3 = arith.constant 0 : index
    %c0_4 = arith.constant 0 : index
    %4 = vector.load %arg3[%c0_3, %c0_4] : memref<1x256xf32, #tpu.memory_space<vmem>>, vector<1x256xf32>
    %5 = vector.broadcast %4 : vector<1x256xf32> to vector<8x256xf32>
    %6 = arith.addf %3, %5 : vector<8x256xf32>
    %cst_5 = arith.constant 0.000000e+00 : f32
    %7 = vector.broadcast %cst_5 : f32 to vector<8x256xf32>
    %8 = arith.maximumf %6, %7 : vector<8x256xf32>
    %9 = arith.truncf %8 : vector<8x256xf32> to vector<8x256xbf16>
    %c0_6 = arith.constant 0 : index
    %c0_7 = arith.constant 0 : index
    %10 = vector.load %arg4[%c0_6, %c0_7] : memref<256x128xbf16, #tpu.memory_space<vmem>>, vector<256x128xbf16>
    %cst_8 = arith.constant dense<0.000000e+00> : vector<8x128xf32>
    %11 = tpu.matmul %9, %10, %cst_8 {dimension_numbers = #tpu.dot_dimension_numbers<[1], [0], [0], [1], [0, 0, 1, 1], [], []>} : vector<8x256xbf16>, vector<256x128xbf16>, vector<8x128xf32> -> vector<8x128xf32>
    %c0_9 = arith.constant 0 : index
    %c0_10 = arith.constant 0 : index
    %12 = vector.load %arg5[%c0_9, %c0_10] : memref<1x128xf32, #tpu.memory_space<vmem>>, vector<1x128xf32>
    %13 = vector.broadcast %12 : vector<1x128xf32> to vector<8x128xf32>
    %14 = arith.addf %11, %13 : vector<8x128xf32>
    %cst_11 = arith.constant 0.000000e+00 : f32
    %15 = vector.broadcast %cst_11 : f32 to vector<8x128xf32>
    %16 = arith.maximumf %14, %15 : vector<8x128xf32>
    %17 = arith.truncf %16 : vector<8x128xf32> to vector<8x128xbf16>
    %c0_12 = arith.constant 0 : index
    %c0_13 = arith.constant 0 : index
    %18 = vector.load %arg6[%c0_12, %c0_13] : memref<128x128xbf16, #tpu.memory_space<vmem>>, vector<128x128xbf16>
    %cst_14 = arith.constant dense<0.000000e+00> : vector<8x128xf32>
    %19 = tpu.matmul %17, %18, %cst_14 {dimension_numbers = #tpu.dot_dimension_numbers<[1], [0], [0], [1], [0, 0, 1, 1], [], []>} : vector<8x128xbf16>, vector<128x128xbf16>, vector<8x128xf32> -> vector<8x128xf32>
    %c0_15 = arith.constant 0 : index
    %c0_16 = arith.constant 0 : index
    %20 = vector.load %arg7[%c0_15, %c0_16] : memref<1x128xf32, #tpu.memory_space<vmem>>, vector<1x128xf32>
    %21 = vector.broadcast %20 : vector<1x128xf32> to vector<8x128xf32>
    %22 = arith.addf %19, %21 : vector<8x128xf32>
    %23 = arith.truncf %22 : vector<8x128xf32> to vector<8x128xbf16>
    %c0_17 = arith.constant 0 : index
    %c0_18 = arith.constant 0 : index
    %24 = vector.load %arg8[%c0_17, %c0_18] : memref<8x128xbf16, #tpu.memory_space<vmem>>, vector<8x128xbf16>
    tpu.vector_store %arg8[%c0_17, %c0_18], %23 {strides = array<i32>} : memref<8x128xbf16, #tpu.memory_space<vmem>>, vector<8x128xbf16>,
    return
  }
  func.func @transform_0(%arg0: i32) -> (i32, i32) {
    %c0_i32 = arith.constant 0 : i32
    %c0_i32_0 = arith.constant 0 : i32
    return %arg0, %c0_i32 : i32, i32
  }
  func.func @transform_1(%arg0: i32) -> (i32, i32) {
    %c0_i32 = arith.constant 0 : i32
    %c0_i32_0 = arith.constant 0 : i32
    %c0_i32_1 = arith.constant 0 : i32
    return %c0_i32, %c0_i32_0 : i32, i32
  }
  func.func @transform_2(%arg0: i32) -> (i32, i32) {
    %c0_i32 = arith.constant 0 : i32
    %c0_i32_0 = arith.constant 0 : i32
    %c0_i32_1 = arith.constant 0 : i32
    return %c0_i32, %c0_i32_0 : i32, i32
  }
  func.func @transform_3(%arg0: i32) -> (i32, i32) {
    %c0_i32 = arith.constant 0 : i32
    %c0_i32_0 = arith.constant 0 : i32
    %c0_i32_1 = arith.constant 0 : i32
    return %c0_i32, %c0_i32_0 : i32, i32
  }
  func.func @transform_4(%arg0: i32) -> (i32, i32) {
    %c0_i32 = arith.constant 0 : i32
    %c0_i32_0 = arith.constant 0 : i32
    %c0_i32_1 = arith.constant 0 : i32
    return %c0_i32, %c0_i32_0 : i32, i32
  }
  func.func @transform_5(%arg0: i32) -> (i32, i32) {
    %c0_i32 = arith.constant 0 : i32
    %c0_i32_0 = arith.constant 0 : i32
    %c0_i32_1 = arith.constant 0 : i32
    return %c0_i32, %c0_i32_0 : i32, i32
  }
  func.func @transform_6(%arg0: i32) -> (i32, i32) {
    %c0_i32 = arith.constant 0 : i32
    %c0_i32_0 = arith.constant 0 : i32
    %c0_i32_1 = arith.constant 0 : i32
    return %c0_i32, %c0_i32_0 : i32, i32
  }
  func.func @transform_7(%arg0: i32) -> (i32, i32) {
    %c0_i32 = arith.constant 0 : i32
    %c0_i32_0 = arith.constant 0 : i32
    return %arg0, %c0_i32 : i32, i32
  }
}

</mosaic_0001>

<bundles_post_ra>
// kernel: _mlp_forward_impl.1
= control target key start
LH: loop header
LB: loop body
LE: loop exit
PB: predicated region body
PF: predicated region fallthrough
CT: control target
= control target key end

     0   :  { %12 = vsyncpa [#allocation3], 0  ;;  %s955_s0 = inlined_call_operand.vmem [shape: f32[8,256], index: 0, kind: input, shape index: {}]   ;;  %s956_s1 = inlined_call_operand.hbm [shape: bf16[256,256], index: 1, kind: input, shape index: {}]   ;;  %s957_s2 = inlined_call_operand.vmem [shape: f32[1,256], index: 2, kind: input, shape index: {}]   ;;  %s958_s3 = inlined_call_operand.hbm [shape: bf16[256,128], index: 3, kind: input, shape index: {}]   ;;  %s959_s4 = inlined_call_operand.vmem [shape: f32[1,128], index: 4, kind: input, shape index: {}]   ;;  %s960_s5 = inlined_call_operand.vmem [shape: bf16[128,128], index: 5, kind: input, shape index: {}]   ;;  %s961_s6 = inlined_call_operand.vmem [shape: f32[1,128], index: 6, kind: input, shape index: {}]   ;;  %s962_s7 = inlined_call_operand.vmem [shape: bf16[8,128], index: 7, kind: output, shape index: {}]  }
   0x1   :  { %13 = vsyncpa [#allocation5], 0  ;;  %s841_s24 = smov [#allocation2]   ;;  %s793_s28 = scalar_lea.hbm %s956_s1, 4096 }
   0x2   :  { %s21_s25 = sshll.u32 %s841_s24, 4  ;;  %p794_p0 = scmp.ne.s32.totalorder %s956_s1, %s793_s28  ;;  %s22_s25 = int_to_ptr.vmem [resolvable:$true] %s21_s25 }
   0x3   :  { %p797_p1 = scmp.lt.u32.totalorder %s793_s28, %s956_s1 }
   0x5   :  { %p799_p2 = pnand %p797_p1, %p794_p0 }
   0x7   :  { %802 = shalt.err (!%p799_p2)
}
   0x8   :  { %s803_s10 = scalar_lea.vmem %s22_s25, 4096  ;;  %p808_p4 = scmp.lt.s32.totalorder %s22_s25, %s22_s25 }
   0x9   :  { %p804_p3 = scmp.ne.s32.totalorder %s22_s25, %s803_s10  ;;  %p809_p5 = scmp.lt.s32.totalorder %s803_s10, %s803_s10 }
   0xb   :  { %p810_p6 = por %p809_p5, %p808_p4 }
   0xd   :  { %p811_p7 = pnand %p810_p6, %p804_p3 }
   0xf   :  { %814 = shalt.err (!%p811_p7)
}
  0x10   :  { %s842_s11 = smov 128   ;;  %s843_s12 = smov 8  }
  0x11   :  { %27 = dma.hbm_to_vmem [thread:$0]  %s956_s1, 4096, %s22_s25, [#allocation3], %s842_s11, %s842_s11, %s843_s12  }
  0x12   :  { %s844_s15 = smov [#allocation4]   ;;  %s815_s19 = scalar_lea.hbm %s958_s3, 2048 }
  0x13   :  { %s35_s16 = sshll.u32 %s844_s15, 4  ;;  %p816_p8 = scmp.ne.s32.totalorder %s958_s3, %s815_s19  ;;  %s36_s16 = int_to_ptr.vmem [resolvable:$true] %s35_s16 }
  0x14   :  { %p819_p9 = scmp.lt.u32.totalorder %s815_s19, %s958_s3 }
  0x16   :  { %p821_p10 = pnand %p819_p9, %p816_p8 }
  0x18   :  { %824 = shalt.err (!%p821_p10)
}
  0x19   :  { %s825_s24 = scalar_lea.vmem %s36_s16, 2048  ;;  %p830_p12 = scmp.lt.s32.totalorder %s36_s16, %s36_s16 }
  0x1a   :  { %p826_p11 = scmp.ne.s32.totalorder %s36_s16, %s825_s24  ;;  %p831_p13 = scmp.lt.s32.totalorder %s825_s24, %s825_s24 }
  0x1c   :  { %p832_p0 = por %p831_p13, %p830_p12 }
  0x1e   :  { %p833_p1 = pnand %p832_p0, %p826_p11 }
  0x20   :  { %836 = shalt.err (!%p833_p1)
}
  0x21   :  { %s845_s1 = smov 64   ;;  %s846_s25 = smov 4  }
  0x22   :  { %41 = dma.hbm_to_vmem [thread:$0]  %s958_s3, 2048, %s36_s16, [#allocation5], %s845_s1, %s845_s1, %s846_s25  }
  0x23   :  { %837 = dma.done.wait [#allocation3], 4096  }
  0x24   :  { %838 = vsyncadd [#allocation3], 4294963200 }
  0x25   :  { %839 = dma.done.wait [#allocation5], 2048  }
  0x26   :  { %840 = vsyncadd [#allocation5], 4294965248  ;;  %v721_v0 = vld [vmem:[#allocation2 + $0x4] ss:$8 sps:$4 sm:$0xff]   ;;  %v723_v1 = vld [vmem:[#allocation2] ss:$8 sps:$4 sm:$0xff]   ;;  %v93_v53 = vlaneseq }
  0x27   :  { %263 = vmatprep.subr.bf16.mxu0 %v721_v0  ;;  %v724_v2 = vld [vmem:[#allocation2 + $0x14] ss:$8 sps:$4 sm:$0xff]   ;;  %v726_v3 = vld [vmem:[#allocation2 + $0x10] ss:$8 sps:$4 sm:$0xff]   ;;  %v727_v4 = vld [vmem:[#allocation2 + $0x24] ss:$8 sps:$4 sm:$0xff]  }
  0x28   :  { %264 = vmatpush1.bf16.msra.mxu0 %v723_v1  ;;  %v729_v5 = vld [vmem:[#allocation2 + $0x20] ss:$8 sps:$4 sm:$0xff]   ;;  %v730_v6 = vld [vmem:[#allocation2 + $0x34] ss:$8 sps:$4 sm:$0xff]   ;;  %v732_v7 = vld [vmem:[#allocation2 + $0x30] ss:$8 sps:$4 sm:$0xff]  }
  0x29   :  { %265 = vmatprep.subr.bf16.mxu0 %v724_v2  ;;  %v733_v8 = vld [vmem:[#allocation2 + $0x44] ss:$8 sps:$4 sm:$0xff]   ;;  %v735_v9 = vld [vmem:[#allocation2 + $0x40] ss:$8 sps:$4 sm:$0xff]   ;;  %v736_v10 = vld [vmem:[#allocation2 + $0x54] ss:$8 sps:$4 sm:$0xff]  }
  0x2a   :  { %v738_v11 = vld [vmem:[#allocation2 + $0x50] ss:$8 sps:$4 sm:$0xff]   ;;  %v739_v12 = vld [vmem:[#allocation2 + $0x64] ss:$8 sps:$4 sm:$0xff]   ;;  %v741_v13 = vld [vmem:[#allocation2 + $0x60] ss:$8 sps:$4 sm:$0xff]  }
  0x2b   :  { %v56_v14 = vld [vmem:[%s955_s0 + $0x8] sm:$0xff]  ;;  %v742_v15 = vld [vmem:[#allocation2 + $0x74] ss:$8 sps:$4 sm:$0xff]   ;;  %v769_v17 = vld [vmem:[#allocation4 + $0x40] sm:$0xff]   ;;  %v847_v52 = vmov 0.0   ;;  %v94_v54 = vshrl.u32 %v93_v53, 7 }
  0x2c   :  { %266 = vmatpush1.bf16.msra.mxu0 %v726_v3  ;;  %v58_v16 = vpack.c.bf16 %v56_v14, %v56_v14  ;;  %v770_v18 = vld [vmem:[#allocation4] sm:$0xff]   ;;  %v771_v19 = vld [vmem:[#allocation4 + $0x48] sm:$0xff]   ;;  %v744_v20 = vld [vmem:[#allocation2 + $0x70] ss:$8 sps:$4 sm:$0xff]   ;;  %662 = vmatprep.subr.bf16.mxu1 %v769_v17  ;;  %vm848_vm0 = vmmov 0  }
  0x2d   :  { %267 = vmatprep.subr.bf16.mxu0 %v727_v4  ;;  %663 = vmatpush3.bf16.msra.mxu1 %v770_v18  ;;  %v772_v21 = vld [vmem:[#allocation4 + $0x8] sm:$0xff]   ;;  %v773_v22 = vld [vmem:[#allocation4 + $0x50] sm:$0xff]   ;;  %v775_v26 = vld [vmem:[#allocation4 + $0x58] sm:$0xff]   ;;  %v95_v55 = vsub.s32 0, %v94_v54  ;;  %v99_v57 = vsub.s32 1, %v94_v54 }
  0x2e   :  { %295 = vmatprep.mubr.bf16.mxu0 %v58_v16  ;;  %664 = vmatprep.subr.bf16.mxu1 %v771_v19  ;;  %v745_v23 = vld [vmem:[#allocation2 + $0x84] ss:$8 sps:$4 sm:$0xff]   ;;  %v747_v24 = vld [vmem:[#allocation2 + $0x80] ss:$8 sps:$4 sm:$0xff]   ;;  %v774_v25 = vld [vmem:[#allocation4 + $0x10] sm:$0xff]  }
  0x2f   :  { %v748_v27 = vld [vmem:[#allocation2 + $0x94] ss:$8 sps:$4 sm:$0xff]   ;;  %v750_v28 = vld [vmem:[#allocation2 + $0x90] ss:$8 sps:$4 sm:$0xff]   ;;  %v751_v30 = vld [vmem:[#allocation2 + $0xa4] ss:$8 sps:$4 sm:$0xff]  }
  0x30   :  { %268 = vmatpush1.bf16.msra.mxu0 %v729_v5  ;;  %v776_v29 = vld [vmem:[#allocation4 + $0x18] sm:$0xff]   ;;  %v777_v31 = vld [vmem:[#allocation4 + $0x60] sm:$0xff]   ;;  %v779_v34 = vld [vmem:[#allocation4 + $0x68] sm:$0xff]  }
  0x31   :  { %269 = vmatprep.subr.bf16.mxu0 %v730_v6  ;;  %665 = vmatpush3.bf16.msra.mxu1 %v772_v21  ;;  %v778_v32 = vld [vmem:[#allocation4 + $0x20] sm:$0xff]   ;;  %v754_v35 = vld [vmem:[#allocation2 + $0xb4] ss:$8 sps:$4 sm:$0xff]   ;;  %v780_v36 = vld [vmem:[#allocation4 + $0x28] sm:$0xff]  }
  0x32   :  { %666 = vmatprep.subr.bf16.mxu1 %v773_v22  ;;  %v753_v33 = vld [vmem:[#allocation2 + $0xa0] ss:$8 sps:$4 sm:$0xff]   ;;  %v756_v37 = vld [vmem:[#allocation2 + $0xb0] ss:$8 sps:$4 sm:$0xff]   ;;  %v757_v38 = vld [vmem:[#allocation2 + $0xc4] ss:$8 sps:$4 sm:$0xff]  }
  0x33   :  { %v759_v39 = vld [vmem:[#allocation2 + $0xc0] ss:$8 sps:$4 sm:$0xff]   ;;  %v760_v40 = vld [vmem:[#allocation2 + $0xd4] ss:$8 sps:$4 sm:$0xff]   ;;  %v762_v41 = vld [vmem:[#allocation2 + $0xd0] ss:$8 sps:$4 sm:$0xff]  }
  0x34   :  { %270 = vmatpush1.bf16.msra.mxu0 %v732_v7  ;;  %v763_v42 = vld [vmem:[#allocation2 + $0xe4] ss:$8 sps:$4 sm:$0xff]   ;;  %v765_v43 = vld [vmem:[#allocation2 + $0xe0] ss:$8 sps:$4 sm:$0xff]   ;;  %v766_v44 = vld [vmem:[#allocation2 + $0xf4] ss:$8 sps:$4 sm:$0xff]  }
  0x35   :  { %271 = vmatprep.subr.bf16.mxu0 %v733_v8  ;;  %667 = vmatpush3.bf16.msra.mxu1 %v774_v25  ;;  %v768_v45 = vld [vmem:[#allocation2 + $0xf0] ss:$8 sps:$4 sm:$0xff]   ;;  %v55_v46 = vld [vmem:[%s955_s0] sm:$0xff]  ;;  %v786_v7 = vld [vmem:[%s960_s5 + $0x8] sm:$0xff]  }
  0x36   :  { %668 = vmatprep.subr.bf16.mxu1 %v775_v26  ;;  %v57_v47 = vpack.c.bf16 %v55_v46, %v55_v46  ;;  %v781_v48 = vld [vmem:[#allocation4 + $0x70] sm:$0xff]   ;;  %v783_v50 = vld [vmem:[#allocation4 + $0x78] sm:$0xff]   ;;  %v91_v56 = vld [vmem:[%s957_s2] sm:$0x3] }
  0x37   :  { %v782_v49 = vld [vmem:[#allocation4 + $0x30] sm:$0xff]   ;;  %v784_v51 = vld [vmem:[#allocation4 + $0x38] sm:$0xff]   ;;  %v96_v58 = vrot.slane %v91_v56, %v95_v55  ;;  %v100_v59 = vrot.slane %v91_v56, %v99_v57  ;;  %v785_v5 = vld [vmem:[%s960_s5] sm:$0xff]  }
  0x38   :  { %272 = vmatpush1.bf16.msra.mxu0 %v735_v9  ;;  %v787_v8 = vld [vmem:[%s960_s5 + $0x10] sm:$0xff]   ;;  %v788_v9 = vld [vmem:[%s960_s5 + $0x18] sm:$0xff]  }
  0x39   :  { %273 = vmatprep.subr.bf16.mxu0 %v736_v10  ;;  %669 = vmatpush3.bf16.msra.mxu1 %v776_v29  ;;  %v789_v10 = vld [vmem:[%s960_s5 + $0x20] sm:$0xff]  }
  0x3a   :  { %670 = vmatprep.subr.bf16.mxu1 %v777_v31 }
  0x3c   :  { %274 = vmatpush1.bf16.msra.mxu0 %v738_v11  ;;  %v790_v11 = vld [vmem:[%s960_s5 + $0x28] sm:$0xff]  }
  0x3d   :  { %275 = vmatprep.subr.bf16.mxu0 %v739_v12  ;;  %671 = vmatpush3.bf16.msra.mxu1 %v778_v32  ;;  %v791_v12 = vld [vmem:[%s960_s5 + $0x30] sm:$0xff]  }
  0x3e   :  { %672 = vmatprep.subr.bf16.mxu1 %v779_v34 }
  0x40   :  { %276 = vmatpush1.bf16.msra.mxu0 %v741_v13  ;;  %v792_v13 = vld [vmem:[%s960_s5 + $0x38] sm:$0xff]  }
  0x41   :  { %277 = vmatprep.subr.bf16.mxu0 %v742_v15  ;;  %673 = vmatpush3.bf16.msra.mxu1 %v780_v36  ;;  %v636_v15 = vld [vmem:[%s959_s4] ss:$0 sm:$0xff] }
  0x42   :  { %674 = vmatprep.subr.bf16.mxu1 %v781_v48 }
  0x44   :  { %278 = vmatpush1.bf16.msra.mxu0 %v744_v20 }
  0x45   :  { %279 = vmatprep.subr.bf16.mxu0 %v745_v23  ;;  %675 = vmatpush3.bf16.msra.mxu1 %v782_v49  ;;  %v653_v23 = vld [vmem:[%s961_s6] ss:$0 sm:$0xff] }
  0x46   :  { %676 = vmatprep.subr.bf16.mxu1 %v783_v50 }
  0x48   :  { %280 = vmatpush1.bf16.msra.mxu0 %v747_v24 }
  0x49   :  { %281 = vmatprep.subr.bf16.mxu0 %v748_v27  ;;  %677 = vmatpush3.bf16.msra.mxu1 %v784_v51 }
  0x4a   :  { %693 = vmatprep.subr.bf16.mxu1 %v847_v52 }
  0x4c   :  { %282 = vmatpush1.bf16.msra.mxu0 %v750_v28 }
  0x4d   :  { %283 = vmatprep.subr.bf16.mxu0 %v751_v30 }
  0x50   :  { %284 = vmatpush1.bf16.msra.mxu0 %v753_v33 }
  0x51   :  { %285 = vmatprep.subr.bf16.mxu0 %v754_v35 }
  0x54   :  { %286 = vmatpush1.bf16.msra.mxu0 %v756_v37 }
  0x55   :  { %287 = vmatprep.subr.bf16.mxu0 %v757_v38 }
  0x58   :  { %288 = vmatpush1.bf16.msra.mxu0 %v759_v39 }
  0x59   :  { %289 = vmatprep.subr.bf16.mxu0 %v760_v40 }
  0x5c   :  { %290 = vmatpush1.bf16.msra.mxu0 %v762_v41 }
  0x5d   :  { %291 = vmatprep.subr.bf16.mxu0 %v763_v42 }
  0x60   :  { %292 = vmatpush1.bf16.msra.mxu0 %v765_v43 }
  0x61   :  { %293 = vmatprep.subr.bf16.mxu0 %v766_v44 }
  0x64   :  { %294 = vmatpush1.bf16.msra.mxu0 %v768_v45 }
  0x67   :  { %296 = vmatmul.mubr.bf16.vlgmr.msra.gmra.mrb[0].mxu0 %v57_v47 }
 0x13a   :  { %v297_v60 = vpop.f32.mrb[0].mxu0 }
 0x13b   :  { %v298_v61 = vadd.f32 %v297_v60, %v96_v58  ;;  %v299_v62 = vpop.f32.mrb[1].mxu0 }
 0x13c   :  { %v300_v63 = vadd.f32 %v299_v62, %v100_v59  ;;  %v301_v0 = vpop.f32.mrb[2].mxu0 }
 0x13d   :  { %v304_v1 = vmax.f32 %v298_v61, 0.0  ;;  %v302_v2 = vpop.f32.mrb[3].mxu0 }
 0x13e   :  { %v305_v3 = vmax.f32 %v300_v63, 0.0 }
 0x13f   :  { %v306_v6 = vpack.c.bf16 %v304_v1, %v304_v1 }
 0x140   :  { %v307_v4 = vpack.c.bf16 %v305_v3, %v305_v3 }
 0x142   :  { %475 = vmatprep.mubr.bf16.mxu1 %v307_v4 }
 0x143   :  { %476 = vmatmul.mubr.bf16.vlgmr.msra.gmra.mrb[0].mxu1 %v306_v6 }
 0x144   :  { %694 = vmatpush3.bf16.msra.mxu1 %v785_v5  ;;  %709 = vmatprep.mubr.msk.bf16.mxu1 %vm848_vm0, %v847_v52 }
 0x145   :  { %695 = vmatprep.subr.bf16.mxu1 %v847_v52 }
 0x148   :  { %696 = vmatpush3.bf16.msra.mxu1 %v786_v7 }
 0x149   :  { %697 = vmatprep.subr.bf16.mxu1 %v847_v52 }
 0x14c   :  { %698 = vmatpush3.bf16.msra.mxu1 %v787_v8 }
 0x14d   :  { %699 = vmatprep.subr.bf16.mxu1 %v847_v52 }
 0x150   :  { %700 = vmatpush3.bf16.msra.mxu1 %v788_v9 }
 0x151   :  { %701 = vmatprep.subr.bf16.mxu1 %v847_v52 }
 0x154   :  { %702 = vmatpush3.bf16.msra.mxu1 %v789_v10 }
 0x155   :  { %703 = vmatprep.subr.bf16.mxu1 %v847_v52 }
 0x158   :  { %704 = vmatpush3.bf16.msra.mxu1 %v790_v11 }
 0x159   :  { %705 = vmatprep.subr.bf16.mxu1 %v847_v52 }
 0x15c   :  { %706 = vmatpush3.bf16.msra.mxu1 %v791_v12 }
 0x15d   :  { %707 = vmatprep.subr.bf16.mxu1 %v847_v52 }
 0x160   :  { %708 = vmatpush3.bf16.msra.mxu1 %v792_v13 }
 0x216   :  { %v678_v14 = vpop.f32.mrb[0].mxu1 }
 0x217   :  { %v679_v16 = vpop.f32.mrb[1].mxu1 }
 0x218   :  { %v680_v17 = vadd.f32 %v679_v16, %v678_v14  ;;  %v681_v18 = vpop.f32.mrb[2].mxu1 }
 0x219   :  { %v682_v19 = vpop.f32.mrb[3].mxu1 }
 0x21a   :  { %v478_v20 = vadd.f32 %v680_v17, %v636_v15 }
 0x21c   :  { %v483_v21 = vmax.f32 %v478_v20, 0.0 }
 0x21e   :  { %v484_v22 = vpack.c.bf16 %v483_v21, %v483_v21 }
 0x220   :  { %710 = vmatmul.mubr.bf16.vlgmr.msra.gmra.mrb[4].mxu1 %v484_v22 }
 0x2f3   :  { %v590_v24 = vpop.f32.mrb[4].mxu1 }
 0x2f4   :  { %v591_v25 = vadd.f32 %v653_v23, %v590_v24  ;;  %v711_v26 = vpop.f32.mrb[5].mxu1 }
 0x2f5   :  { %v593_v27 = vpop.f32.mrb[6].mxu1 }
 0x2f6   :  { %v596_v28 = vpack.c.bf16 %v591_v25, %v591_v25  ;;  %v712_v29 = vpop.f32.mrb[7].mxu1 }
 0x2f8   :  { %597 = vst [vmem:[%s962_s7] sm:$0xf] %v596_v28 }
 0x2f9   :  { %602 = vsyncpa [#allocation3], 1 }
 0x2fa   :  { %603 = vsyncpa [#allocation5], 1 }

// kernel: _mlp_forward_impl.1
= control target key start
LH: loop header
LB: loop body
LE: loop exit
PB: predicated region body
PF: predicated region fallthrough
CT: control target
= control target key end

     0   :  { %12 = vsyncpa [#allocation3], 0  ;;  %s955_s0 = inlined_call_operand.vmem [shape: f32[8,256], index: 0, kind: input, shape index: {}]   ;;  %s956_s1 = inlined_call_operand.hbm [shape: bf16[256,256], index: 1, kind: input, shape index: {}]   ;;  %s957_s2 = inlined_call_operand.vmem [shape: f32[1,256], index: 2, kind: input, shape index: {}]   ;;  %s958_s3 = inlined_call_operand.hbm [shape: bf16[256,128], index: 3, kind: input, shape index: {}]   ;;  %s959_s4 = inlined_call_operand.vmem [shape: f32[1,128], index: 4, kind: input, shape index: {}]   ;;  %s960_s5 = inlined_call_operand.vmem [shape: bf16[128,128], index: 5, kind: input, shape index: {}]   ;;  %s961_s6 = inlined_call_operand.vmem [shape: f32[1,128], index: 6, kind: input, shape index: {}]   ;;  %s962_s7 = inlined_call_operand.vmem [shape: bf16[8,128], index: 7, kind: output, shape index: {}]  }
   0x1   :  { %13 = vsyncpa [#allocation5], 0  ;;  %s841_s24 = smov [#allocation2]   ;;  %s793_s28 = scalar_lea.hbm %s956_s1, 4096 }
   0x2   :  { %s21_s25 = sshll.u32 %s841_s24, 4  ;;  %p794_p0 = scmp.ne.s32.totalorder %s956_s1, %s793_s28  ;;  %s22_s25 = int_to_ptr.vmem [resolvable:$true] %s21_s25 }
   0x3   :  { %p797_p1 = scmp.lt.u32.totalorder %s793_s28, %s956_s1 }
   0x5   :  { %p799_p2 = pnand %p797_p1, %p794_p0 }
   0x7   :  { %802 = shalt.err (!%p799_p2)
}
   0x8   :  { %s803_s10 = scalar_lea.vmem %s22_s25, 4096  ;;  %p808_p4 = scmp.lt.s32.totalorder %s22_s25, %s22_s25 }
   0x9   :  { %p804_p3 = scmp.ne.s32.totalorder %s22_s25, %s803_s10  ;;  %p809_p5 = scmp.lt.s32.totalorder %s803_s10, %s803_s10 }
   0xb   :  { %p810_p6 = por %p809_p5, %p808_p4 }
   0xd   :  { %p811_p7 = pnand %p810_p6, %p804_p3 }
   0xf   :  { %814 = shalt.err (!%p811_p7)
}
  0x10   :  { %s842_s11 = smov 128   ;;  %s843_s12 = smov 8  }
  0x11   :  { %27 = dma.hbm_to_vmem [thread:$0]  %s956_s1, 4096, %s22_s25, [#allocation3], %s842_s11, %s842_s11, %s843_s12  }
  0x12   :  { %s844_s15 = smov [#allocation4]   ;;  %s815_s19 = scalar_lea.hbm %s958_s3, 2048 }
  0x13   :  { %s35_s16 = sshll.u32 %s844_s15, 4  ;;  %p816_p8 = scmp.ne.s32.totalorder %s958_s3, %s815_s19  ;;  %s36_s16 = int_to_ptr.vmem [resolvable:$true] %s35_s16 }
  0x14   :  { %p819_p9 = scmp.lt.u32.totalorder %s815_s19, %s958_s3 }
  0x16   :  { %p821_p10 = pnand %p819_p9, %p816_p8 }
  0x18   :  { %824 = shalt.err (!%p821_p10)
}
  0x19   :  { %s825_s24 = scalar_lea.vmem %s36_s16, 2048  ;;  %p830_p12 = scmp.lt.s32.totalorder %s36_s16, %s36_s16 }
  0x1a   :  { %p826_p11 = scmp.ne.s32.totalorder %s36_s16, %s825_s24  ;;  %p831_p13 = scmp.lt.s32.totalorder %s825_s24, %s825_s24 }
  0x1c   :  { %p832_p0 = por %p831_p13, %p830_p12 }
  0x1e   :  { %p833_p1 = pnand %p832_p0, %p826_p11 }
  0x20   :  { %836 = shalt.err (!%p833_p1)
}
  0x21   :  { %s845_s1 = smov 64   ;;  %s846_s25 = smov 4  }
  0x22   :  { %41 = dma.hbm_to_vmem [thread:$0]  %s958_s3, 2048, %s36_s16, [#allocation5], %s845_s1, %s845_s1, %s846_s25  }
  0x23   :  { %837 = dma.done.wait [#allocation3], 4096  }
  0x24   :  { %838 = vsyncadd [#allocation3], 4294963200 }
  0x25   :  { %839 = dma.done.wait [#allocation5], 2048  }
  0x26   :  { %840 = vsyncadd [#allocation5], 4294965248  ;;  %v721_v0 = vld [vmem:[#allocation2 + $0x4] ss:$8 sps:$4 sm:$0xff]   ;;  %v723_v1 = vld [vmem:[#allocation2] ss:$8 sps:$4 sm:$0xff]   ;;  %v93_v53 = vlaneseq }
  0x27   :  { %263 = vmatprep.subr.bf16.mxu0 %v721_v0  ;;  %v724_v2 = vld [vmem:[#allocation2 + $0x14] ss:$8 sps:$4 sm:$0xff]   ;;  %v726_v3 = vld [vmem:[#allocation2 + $0x10] ss:$8 sps:$4 sm:$0xff]   ;;  %v727_v4 = vld [vmem:[#allocation2 + $0x24] ss:$8 sps:$4 sm:$0xff]  }
  0x28   :  { %264 = vmatpush1.bf16.msra.mxu0 %v723_v1  ;;  %v729_v5 = vld [vmem:[#allocation2 + $0x20] ss:$8 sps:$4 sm:$0xff]   ;;  %v730_v6 = vld [vmem:[#allocation2 + $0x34] ss:$8 sps:$4 sm:$0xff]   ;;  %v732_v7 = vld [vmem:[#allocation2 + $0x30] ss:$8 sps:$4 sm:$0xff]  }
  0x29   :  { %265 = vmatprep.subr.bf16.mxu0 %v724_v2  ;;  %v733_v8 = vld [vmem:[#allocation2 + $0x44] ss:$8 sps:$4 sm:$0xff]   ;;  %v735_v9 = vld [vmem:[#allocation2 + $0x40] ss:$8 sps:$4 sm:$0xff]   ;;  %v736_v10 = vld [vmem:[#allocation2 + $0x54] ss:$8 sps:$4 sm:$0xff]  }
  0x2a   :  { %v738_v11 = vld [vmem:[#allocation2 + $0x50] ss:$8 sps:$4 sm:$0xff]   ;;  %v739_v12 = vld [vmem:[#allocation2 + $0x64] ss:$8 sps:$4 sm:$0xff]   ;;  %v741_v13 = vld [vmem:[#allocation2 + $0x60] ss:$8 sps:$4 sm:$0xff]  }
  0x2b   :  { %v56_v14 = vld [vmem:[%s955_s0 + $0x8] sm:$0xff]  ;;  %v742_v15 = vld [vmem:[#allocation2 + $0x74] ss:$8 sps:$4 sm:$0xff]   ;;  %v769_v17 = vld [vmem:[#allocation4 + $0x40] sm:$0xff]   ;;  %v847_v52 = vmov 0.0   ;;  %v94_v54 = vshrl.u32 %v93_v53, 7 }
  0x2c   :  { %266 = vmatpush1.bf16.msra.mxu0 %v726_v3  ;;  %v58_v16 = vpack.c.bf16 %v56_v14, %v56_v14  ;;  %v770_v18 = vld [vmem:[#allocation4] sm:$0xff]   ;;  %v771_v19 = vld [vmem:[#allocation4 + $0x48] sm:$0xff]   ;;  %v744_v20 = vld [vmem:[#allocation2 + $0x70] ss:$8 sps:$4 sm:$0xff]   ;;  %662 = vmatprep.subr.bf16.mxu1 %v769_v17  ;;  %vm848_vm0 = vmmov 0  }
  0x2d   :  { %267 = vmatprep.subr.bf16.mxu0 %v727_v4  ;;  %663 = vmatpush3.bf16.msra.mxu1 %v770_v18  ;;  %v772_v21 = vld [vmem:[#allocation4 + $0x8] sm:$0xff]   ;;  %v773_v22 = vld [vmem:[#allocation4 + $0x50] sm:$0xff]   ;;  %v775_v26 = vld [vmem:[#allocation4 + $0x58] sm:$0xff]   ;;  %v95_v55 = vsub.s32 0, %v94_v54  ;;  %v99_v57 = vsub.s32 1, %v94_v54 }
  0x2e   :  { %295 = vmatprep.mubr.bf16.mxu0 %v58_v16  ;;  %664 = vmatprep.subr.bf16.mxu1 %v771_v19  ;;  %v745_v23 = vld [vmem:[#allocation2 + $0x84] ss:$8 sps:$4 sm:$0xff]   ;;  %v747_v24 = vld [vmem:[#allocation2 + $0x80] ss:$8 sps:$4 sm:$0xff]   ;;  %v774_v25 = vld [vmem:[#allocation4 + $0x10] sm:$0xff]  }
  0x2f   :  { %v748_v27 = vld [vmem:[#allocation2 + $0x94] ss:$8 sps:$4 sm:$0xff]   ;;  %v750_v28 = vld [vmem:[#allocation2 + $0x90] ss:$8 sps:$4 sm:$0xff]   ;;  %v751_v30 = vld [vmem:[#allocation2 + $0xa4] ss:$8 sps:$4 sm:$0xff]  }
  0x30   :  { %268 = vmatpush1.bf16.msra.mxu0 %v729_v5  ;;  %v776_v29 = vld [vmem:[#allocation4 + $0x18] sm:$0xff]   ;;  %v777_v31 = vld [vmem:[#allocation4 + $0x60] sm:$0xff]   ;;  %v779_v34 = vld [vmem:[#allocation4 + $0x68] sm:$0xff]  }
  0x31   :  { %269 = vmatprep.subr.bf16.mxu0 %v730_v6  ;;  %665 = vmatpush3.bf16.msra.mxu1 %v772_v21  ;;  %v778_v32 = vld [vmem:[#allocation4 + $0x20] sm:$0xff]   ;;  %v754_v35 = vld [vmem:[#allocation2 + $0xb4] ss:$8 sps:$4 sm:$0xff]   ;;  %v780_v36 = vld [vmem:[#allocation4 + $0x28] sm:$0xff]  }
  0x32   :  { %666 = vmatprep.subr.bf16.mxu1 %v773_v22  ;;  %v753_v33 = vld [vmem:[#allocation2 + $0xa0] ss:$8 sps:$4 sm:$0xff]   ;;  %v756_v37 = vld [vmem:[#allocation2 + $0xb0] ss:$8 sps:$4 sm:$0xff]   ;;  %v757_v38 = vld [vmem:[#allocation2 + $0xc4] ss:$8 sps:$4 sm:$0xff]  }
  0x33   :  { %v759_v39 = vld [vmem:[#allocation2 + $0xc0] ss:$8 sps:$4 sm:$0xff]   ;;  %v760_v40 = vld [vmem:[#allocation2 + $0xd4] ss:$8 sps:$4 sm:$0xff]   ;;  %v762_v41 = vld [vmem:[#allocation2 + $0xd0] ss:$8 sps:$4 sm:$0xff]  }
  0x34   :  { %270 = vmatpush1.bf16.msra.mxu0 %v732_v7  ;;  %v763_v42 = vld [vmem:[#allocation2 + $0xe4] ss:$8 sps:$4 sm:$0xff]   ;;  %v765_v43 = vld [vmem:[#allocation2 + $0xe0] ss:$8 sps:$4 sm:$0xff]   ;;  %v766_v44 = vld [vmem:[#allocation2 + $0xf4] ss:$8 sps:$4 sm:$0xff]  }
  0x35   :  { %271 = vmatprep.subr.bf16.mxu0 %v733_v8  ;;  %667 = vmatpush3.bf16.msra.mxu1 %v774_v25  ;;  %v768_v45 = vld [vmem:[#allocation2 + $0xf0] ss:$8 sps:$4 sm:$0xff]   ;;  %v55_v46 = vld [vmem:[%s955_s0] sm:$0xff]  ;;  %v786_v7 = vld [vmem:[%s960_s5 + $0x8] sm:$0xff]  }
  0x36   :  { %668 = vmatprep.subr.bf16.mxu1 %v775_v26  ;;  %v57_v47 = vpack.c.bf16 %v55_v46, %v55_v46  ;;  %v781_v48 = vld [vmem:[#allocation4 + $0x70] sm:$0xff]   ;;  %v783_v50 = vld [vmem:[#allocation4 + $0x78] sm:$0xff]   ;;  %v91_v56 = vld [vmem:[%s957_s2] sm:$0x3] }
  0x37   :  { %v782_v49 = vld [vmem:[#allocation4 + $0x30] sm:$0xff]   ;;  %v784_v51 = vld [vmem:[#allocation4 + $0x38] sm:$0xff]   ;;  %v96_v58 = vrot.slane %v91_v56, %v95_v55  ;;  %v100_v59 = vrot.slane %v91_v56, %v99_v57  ;;  %v785_v5 = vld [vmem:[%s960_s5] sm:$0xff]  }
  0x38   :  { %272 = vmatpush1.bf16.msra.mxu0 %v735_v9  ;;  %v787_v8 = vld [vmem:[%s960_s5 + $0x10] sm:$0xff]   ;;  %v788_v9 = vld [vmem:[%s960_s5 + $0x18] sm:$0xff]  }
  0x39   :  { %273 = vmatprep.subr.bf16.mxu0 %v736_v10  ;;  %669 = vmatpush3.bf16.msra.mxu1 %v776_v29  ;;  %v789_v10 = vld [vmem:[%s960_s5 + $0x20] sm:$0xff]  }
  0x3a   :  { %670 = vmatprep.subr.bf16.mxu1 %v777_v31 }
  0x3c   :  { %274 = vmatpush1.bf16.msra.mxu0 %v738_v11  ;;  %v790_v11 = vld [vmem:[%s960_s5 + $0x28] sm:$0xff]  }
  0x3d   :  { %275 = vmatprep.subr.bf16.mxu0 %v739_v12  ;;  %671 = vmatpush3.bf16.msra.mxu1 %v778_v32  ;;  %v791_v12 = vld [vmem:[%s960_s5 + $0x30] sm:$0xff]  }
  0x3e   :  { %672 = vmatprep.subr.bf16.mxu1 %v779_v34 }
  0x40   :  { %276 = vmatpush1.bf16.msra.mxu0 %v741_v13  ;;  %v792_v13 = vld [vmem:[%s960_s5 + $0x38] sm:$0xff]  }
  0x41   :  { %277 = vmatprep.subr.bf16.mxu0 %v742_v15  ;;  %673 = vmatpush3.bf16.msra.mxu1 %v780_v36  ;;  %v636_v15 = vld [vmem:[%s959_s4] ss:$0 sm:$0xff] }
  0x42   :  { %674 = vmatprep.subr.bf16.mxu1 %v781_v48 }
  0x44   :  { %278 = vmatpush1.bf16.msra.mxu0 %v744_v20 }
  0x45   :  { %279 = vmatprep.subr.bf16.mxu0 %v745_v23  ;;  %675 = vmatpush3.bf16.msra.mxu1 %v782_v49  ;;  %v653_v23 = vld [vmem:[%s961_s6] ss:$0 sm:$0xff] }
  0x46   :  { %676 = vmatprep.subr.bf16.mxu1 %v783_v50 }
  0x48   :  { %280 = vmatpush1.bf16.msra.mxu0 %v747_v24 }
  0x49   :  { %281 = vmatprep.subr.bf16.mxu0 %v748_v27  ;;  %677 = vmatpush3.bf16.msra.mxu1 %v784_v51 }
  0x4a   :  { %693 = vmatprep.subr.bf16.mxu1 %v847_v52 }
  0x4c   :  { %282 = vmatpush1.bf16.msra.mxu0 %v750_v28 }
  0x4d   :  { %283 = vmatprep.subr.bf16.mxu0 %v751_v30 }
  0x50   :  { %284 = vmatpush1.bf16.msra.mxu0 %v753_v33 }
  0x51   :  { %285 = vmatprep.subr.bf16.mxu0 %v754_v35 }
  0x54   :  { %286 = vmatpush1.bf16.msra.mxu0 %v756_v37 }
  0x55   :  { %287 = vmatprep.subr.bf16.mxu0 %v757_v38 }
  0x58   :  { %288 = vmatpush1.bf16.msra.mxu0 %v759_v39 }
  0x59   :  { %289 = vmatprep.subr.bf16.mxu0 %v760_v40 }
  0x5c   :  { %290 = vmatpush1.bf16.msra.mxu0 %v762_v41 }
  0x5d   :  { %291 = vmatprep.subr.bf16.mxu0 %v763_v42 }
  0x60   :  { %292 = vmatpush1.bf16.msra.mxu0 %v765_v43 }
  0x61   :  { %293 = vmatprep.subr.bf16.mxu0 %v766_v44 }
  0x64   :  { %294 = vmatpush1.bf16.msra.mxu0 %v768_v45 }
  0x67   :  { %296 = vmatmul.mubr.bf16.vlgmr.msra.gmra.mrb[0].mxu0 %v57_v47 }
 0x13a   :  { %v297_v60 = vpop.f32.mrb[0].mxu0 }
 0x13b   :  { %v298_v61 = vadd.f32 %v297_v60, %v96_v58  ;;  %v299_v62 = vpop.f32.mrb[1].mxu0 }
 0x13c   :  { %v300_v63 = vadd.f32 %v299_v62, %v100_v59  ;;  %v301_v0 = vpop.f32.mrb[2].mxu0 }
 0x13d   :  { %v304_v1 = vmax.f32 %v298_v61, 0.0  ;;  %v302_v2 = vpop.f32.mrb[3].mxu0 }
 0x13e   :  { %v305_v3 = vmax.f32 %v300_v63, 0.0 }
 0x13f   :  { %v306_v6 = vpack.c.bf16 %v304_v1, %v304_v1 }
 0x140   :  { %v307_v4 = vpack.c.bf16 %v305_v3, %v305_v3 }
 0x142   :  { %475 = vmatprep.mubr.bf16.mxu1 %v307_v4 }
 0x143   :  { %476 = vmatmul.mubr.bf16.vlgmr.msra.gmra.mrb[0].mxu1 %v306_v6 }
 0x144   :  { %694 = vmatpush3.bf16.msra.mxu1 %v785_v5  ;;  %709 = vmatprep.mubr.msk.bf16.mxu1 %vm848_vm0, %v847_v52 }
 0x145   :  { %695 = vmatprep.subr.bf16.mxu1 %v847_v52 }
 0x148   :  { %696 = vmatpush3.bf16.msra.mxu1 %v786_v7 }
 0x149   :  { %697 = vmatprep.subr.bf16.mxu1 %v847_v52 }
 0x14c   :  { %698 = vmatpush3.bf16.msra.mxu1 %v787_v8 }
 0x14d   :  { %699 = vmatprep.subr.bf16.mxu1 %v847_v52 }
 0x150   :  { %700 = vmatpush3.bf16.msra.mxu1 %v788_v9 }
 0x151   :  { %701 = vmatprep.subr.bf16.mxu1 %v847_v52 }
 0x154   :  { %702 = vmatpush3.bf16.msra.mxu1 %v789_v10 }
 0x155   :  { %703 = vmatprep.subr.bf16.mxu1 %v847_v52 }
 0x158   :  { %704 = vmatpush3.bf16.msra.mxu1 %v790_v11 }
 0x159   :  { %705 = vmatprep.subr.bf16.mxu1 %v847_v52 }
 0x15c   :  { %706 = vmatpush3.bf16.msra.mxu1 %v791_v12 }
 0x15d   :  { %707 = vmatprep.subr.bf16.mxu1 %v847_v52 }
 0x160   :  { %708 = vmatpush3.bf16.msra.mxu1 %v792_v13 }
 0x216   :  { %v678_v14 = vpop.f32.mrb[0].mxu1 }
 0x217   :  { %v679_v16 = vpop.f32.mrb[1].mxu1 }
 0x218   :  { %v680_v17 = vadd.f32 %v679_v16, %v678_v14  ;;  %v681_v18 = vpop.f32.mrb[2].mxu1 }
 0x219   :  { %v682_v19 = vpop.f32.mrb[3].mxu1 }
 0x21a   :  { %v478_v20 = vadd.f32 %v680_v17, %v636_v15 }
 0x21c   :  { %v483_v21 = vmax.f32 %v478_v20, 0.0 }
 0x21e   :  { %v484_v22 = vpack.c.bf16 %v483_v21, %v483_v21 }
 0x220   :  { %710 = vmatmul.mubr.bf16.vlgmr.msra.gmra.mrb[4].mxu1 %v484_v22 }
 0x2f3   :  { %v590_v24 = vpop.f32.mrb[4].mxu1 }
 0x2f4   :  { %v591_v25 = vadd.f32 %v653_v23, %v590_v24  ;;  %v711_v26 = vpop.f32.mrb[5].mxu1 }
 0x2f5   :  { %v593_v27 = vpop.f32.mrb[6].mxu1 }
 0x2f6   :  { %v596_v28 = vpack.c.bf16 %v591_v25, %v591_v25  ;;  %v712_v29 = vpop.f32.mrb[7].mxu1 }
 0x2f8   :  { %597 = vst [vmem:[%s962_s7] sm:$0xf] %v596_v28 }
 0x2f9   :  { %602 = vsyncpa [#allocation3], 1 }
 0x2fa   :  { %603 = vsyncpa [#allocation5], 1 }

</bundles_post_ra>
